<compile_context>
chip_gen: v7x
topology: tpu7x:2x2x1
jax: 0.10.0
libtpu: 0.0.40
codegen_flags: <defaults>
</compile_context>

<pallas_src>
import functools
import math

import jax
import jax.numpy as jnp
from jax import lax
from jax.experimental import pallas as pl


# ----------------------------------------------------------------------------
# Fused kernel: whole (S, B, E) slab in one invocation (no grid)
# ----------------------------------------------------------------------------
def _fused_mha_kernel(x_ref, wqkv_ref, bqkv_ref, wo_ref, bo_ref, o_ref, *,
                      num_heads, batch, embed):
    # x_ref / o_ref: (S, B*E)   -- free collapse of (S, B, E), batch b lives in
    #                              lanes [b*E, (b+1)*E)
    # wqkv_ref:      (3E, E)    -- PyTorch in_proj_weight layout (out, in)
    # bqkv_ref:      (1, 3E)
    # wo_ref:        (E, E)     -- PyTorch out_proj.weight layout (out, in)
    # bo_ref:        (1, E)
    S = x_ref.shape[0]
    B, E, H = batch, embed, num_heads
    Dh = E // H
    scale = 1.0 / math.sqrt(Dh)

    x = x_ref[...]                                  # (S, B*E)
    wqkv = wqkv_ref[...]                            # (3E, E)
    bqkv = bqkv_ref[...]                            # (1, 3E)
    wo = wo_ref[...]                                # (E, E)
    # Hoisted broadcast (JAX does not CSE broadcast_in_dim inside loops).
    bo_b = jnp.broadcast_to(bo_ref[...], (S, E)).astype(jnp.float32)

    for b in range(B):                              # static unroll over batch
        xb = x[:, b * E:(b + 1) * E]                # (S, E), static lane slice

        # QKV in-projection.  Contract on the last axis of BOTH operands so the
        # MXU consumes the (out, in) weight directly (no transpose anywhere).
        qkv = lax.dot_general(
            xb, wqkv,
            dimension_numbers=(((1,), (1,)), ((), ())),
            preferred_element_type=jnp.float32,
        ) + bqkv                                    # (S, 3E)

        out_b = bo_b                                # (S, E) accumulator (starts at bias)
        for h in range(H):                          # static unroll over heads
            lo = h * Dh
            qh = qkv[:, lo:lo + Dh] * scale         # scale folded into q (S*Dh elems)
            kh = qkv[:, E + lo:E + lo + Dh]
            vh = qkv[:, 2 * E + lo:2 * E + lo + Dh]

            # scores = (q . k^T); transposed RHS via contraction dims
            s = lax.dot_general(
                qh, kh,
                dimension_numbers=(((1,), (1,)), ((), ())),
                preferred_element_type=jnp.float32,
            )                                       # (S, S)

            m = jnp.max(s, axis=-1, keepdims=True)
            p = jnp.exp(s - m)
            denom = jnp.sum(p, axis=-1, keepdims=True)
            ctx = jnp.dot(p, vh, preferred_element_type=jnp.float32)   # (S, Dh)
            # Deferred normalization on the (S, Dh) context, not the (S, S) probs.
            ctx = ctx * pl.reciprocal(denom, approx=False)

            # Per-head contribution to the output projection: contract the Dh axis
            # of ctx with the matching column slice of wo (no head concat needed).
            out_b = out_b + lax.dot_general(
                ctx, wo[:, lo:lo + Dh],
                dimension_numbers=(((1,), (1,)), ((), ())),
                preferred_element_type=jnp.float32,
            )                                       # (S, E)

        o_ref[:, b * E:(b + 1) * E] = out_b


# ----------------------------------------------------------------------------
# Full forward: MultiheadAttention(x, x, x) -> attn_output, x is (S, B, E)
# ----------------------------------------------------------------------------
@functools.partial(jax.jit, static_argnums=(5,))
def attention_module_forward(x, in_proj_w, in_proj_b, out_proj_w, out_proj_b,
                             num_heads):
    S, B, E = x.shape
    # Contiguous collapse of the trailing dims: metadata-only, no HBM pass and
    # no transpose (kernel separates batches with static lane slices).
    x2 = x.reshape(S, B * E)
    b_qkv = in_proj_b.reshape(1, 3 * E)
    b_o = out_proj_b.reshape(1, E)

    out2 = pl.pallas_call(
        functools.partial(_fused_mha_kernel, num_heads=num_heads, batch=B, embed=E),
        out_shape=jax.ShapeDtypeStruct((S, B * E), jnp.float32),
    )(x2, in_proj_w, b_qkv, out_proj_w, b_o)

    return out2.reshape(S, B, E)


# ----------------------------------------------------------------------------
# Pure-JAX reference (matches nn.MultiheadAttention default forward)
# ----------------------------------------------------------------------------
def reference_forward(x, in_proj_w, in_proj_b, out_proj_w, out_proj_b, num_heads):
    S, B, E = x.shape
    H = num_heads
    Dh = E // H
    qkv = x.reshape(S * B, E) @ in_proj_w.T + in_proj_b
    qkv = qkv.reshape(S, B, 3, H, Dh)
    q = qkv[:, :, 0].reshape(S, B * H, Dh).transpose(1, 0, 2)
    k = qkv[:, :, 1].reshape(S, B * H, Dh).transpose(1, 0, 2)
    v = qkv[:, :, 2].reshape(S, B * H, Dh).transpose(1, 0, 2)
    s = jnp.einsum("bqd,bkd->bqk", q, k) / jnp.sqrt(jnp.float32(Dh))
    p = jax.nn.softmax(s, axis=-1)
    o = jnp.einsum("bqk,bkd->bqd", p, v)
    o = o.transpose(1, 0, 2).reshape(S * B, E)
    return (o @ out_proj_w.T + out_proj_b).reshape(S, B, E)


if __name__ == "__main__":
    # hidden_size=32, num_heads=4 (head_dim=8); seq=8, batch=2; x is (S, B, E)
    S, B, E, H = 8, 2, 32, 4

    key = jax.random.PRNGKey(0)
    k_x, k_w1, k_b1, k_w2, k_b2 = jax.random.split(key, 5)

    x = jax.random.normal(k_x, (S, B, E), dtype=jnp.float32)
    # deterministic synthetic parameters (shapes match nn.MultiheadAttention)
    in_proj_w = jax.random.normal(k_w1, (3 * E, E), dtype=jnp.float32) * 0.05
    in_proj_b = jax.random.normal(k_b1, (3 * E,), dtype=jnp.float32) * 0.01
    out_proj_w = jax.random.normal(k_w2, (E, E), dtype=jnp.float32) * 0.05
    out_proj_b = jax.random.normal(k_b2, (E,), dtype=jnp.float32) * 0.01

    out = attention_module_forward(x, in_proj_w, in_proj_b,
                                   out_proj_w, out_proj_b, H)
    out = jax.block_until_ready(out)

    ref = reference_forward(x, in_proj_w, in_proj_b, out_proj_w, out_proj_b, H)
    assert out.shape == (S, B, E)
    assert jnp.allclose(out, ref, atol=1e-4, rtol=1e-4), \
        f"max err {jnp.max(jnp.abs(out - ref))}"

    print("KERNEL_OK")
</pallas_src>

<mosaic_0001>
module attributes {stable_mosaic.version = 11 : i64} {
  func.func @_fused_mha_kernel(%arg0: memref<8x64xf32, #tpu.memory_space<vmem>>, %arg1: memref<96x32xf32, #tpu.memory_space<vmem>>, %arg2: memref<1x96xf32, #tpu.memory_space<vmem>>, %arg3: memref<32x32xf32, #tpu.memory_space<vmem>>, %arg4: memref<1x32xf32, #tpu.memory_space<vmem>>, %arg5: memref<8x64xf32, #tpu.memory_space<vmem>>) attributes {dimension_semantics = [], scalar_prefetch = 0 : i64, scratch_operands = 0 : i64, tpu.core_type = #tpu.core_type<tc>} {
    %c0 = arith.constant 0 : index
    %c0_0 = arith.constant 0 : index
    %0 = vector.load %arg0[%c0, %c0_0] : memref<8x64xf32, #tpu.memory_space<vmem>>, vector<8x64xf32>
    %c0_1 = arith.constant 0 : index
    %c0_2 = arith.constant 0 : index
    %1 = vector.load %arg1[%c0_1, %c0_2] : memref<96x32xf32, #tpu.memory_space<vmem>>, vector<96x32xf32>
    %c0_3 = arith.constant 0 : index
    %c0_4 = arith.constant 0 : index
    %2 = vector.load %arg2[%c0_3, %c0_4] : memref<1x96xf32, #tpu.memory_space<vmem>>, vector<1x96xf32>
    %c0_5 = arith.constant 0 : index
    %c0_6 = arith.constant 0 : index
    %3 = vector.load %arg3[%c0_5, %c0_6] : memref<32x32xf32, #tpu.memory_space<vmem>>, vector<32x32xf32>
    %c0_7 = arith.constant 0 : index
    %c0_8 = arith.constant 0 : index
    %4 = vector.load %arg4[%c0_7, %c0_8] : memref<1x32xf32, #tpu.memory_space<vmem>>, vector<1x32xf32>
    %5 = vector.shape_cast %4 : vector<1x32xf32> to vector<1x32xf32>
    %6 = vector.broadcast %5 : vector<1x32xf32> to vector<8x32xf32>
    %7 = vector.extract_strided_slice %0 {offsets = [0, 0], sizes = [8, 32], strides = [1, 1]} : vector<8x64xf32> to vector<8x32xf32>
    %cst = arith.constant dense<0.000000e+00> : vector<8x96xf32>
    %8 = tpu.matmul %7, %1, %cst {dimension_numbers = #tpu.dot_dimension_numbers<[1], [1], [0], [0], [0, 0, 1, 0], [], []>} : vector<8x32xf32>, vector<96x32xf32>, vector<8x96xf32> -> vector<8x96xf32>
    %9 = vector.broadcast %2 : vector<1x96xf32> to vector<8x96xf32>
    %10 = arith.addf %8, %9 : vector<8x96xf32>
    %11 = vector.extract_strided_slice %10 {offsets = [0, 0], sizes = [8, 8], strides = [1, 1]} : vector<8x96xf32> to vector<8x8xf32>
    %cst_9 = arith.constant 0.353553385 : f32
    %12 = vector.broadcast %cst_9 : f32 to vector<8x8xf32>
    %13 = arith.mulf %11, %12 : vector<8x8xf32>
    %14 = vector.extract_strided_slice %10 {offsets = [0, 32], sizes = [8, 8], strides = [1, 1]} : vector<8x96xf32> to vector<8x8xf32>
    %15 = vector.extract_strided_slice %10 {offsets = [0, 64], sizes = [8, 8], strides = [1, 1]} : vector<8x96xf32> to vector<8x8xf32>
    %cst_10 = arith.constant dense<0.000000e+00> : vector<8x8xf32>
    %16 = tpu.matmul %13, %14, %cst_10 {dimension_numbers = #tpu.dot_dimension_numbers<[1], [1], [0], [0], [0, 0, 1, 0], [], []>} : vector<8x8xf32>, vector<8x8xf32>, vector<8x8xf32> -> vector<8x8xf32>
    %cst_11 = arith.constant dense<0xFF800000> : vector<8xf32>
    %17 = vector.multi_reduction <maximumf>, %16, %cst_11 [1] : vector<8x8xf32> to vector<8xf32>
    %18 = vector.shape_cast %17 : vector<8xf32> to vector<8x1xf32>
    %19 = vector.broadcast %18 : vector<8x1xf32> to vector<8x8xf32>
    %20 = arith.subf %16, %19 : vector<8x8xf32>
    %21 = math.exp %20 : vector<8x8xf32>
    %cst_12 = arith.constant dense<0.000000e+00> : vector<8xf32>
    %22 = vector.multi_reduction <add>, %21, %cst_12 [1] : vector<8x8xf32> to vector<8xf32>
    %23 = vector.shape_cast %22 : vector<8xf32> to vector<8x1xf32>
    %cst_13 = arith.constant dense<0.000000e+00> : vector<8x8xf32>
    %24 = tpu.matmul %21, %15, %cst_13 {dimension_numbers = #tpu.dot_dimension_numbers<[1], [0], [0], [1], [0, 0, 1, 1], [], []>} : vector<8x8xf32>, vector<8x8xf32>, vector<8x8xf32> -> vector<8x8xf32>
    %25 = tpu.reciprocal %23 : vector<8x1xf32> -> vector<8x1xf32>
    %26 = vector.broadcast %25 : vector<8x1xf32> to vector<8x8xf32>
    %27 = arith.mulf %24, %26 : vector<8x8xf32>
    %28 = vector.extract_strided_slice %3 {offsets = [0, 0], sizes = [32, 8], strides = [1, 1]} : vector<32x32xf32> to vector<32x8xf32>
    %cst_14 = arith.constant dense<0.000000e+00> : vector<8x32xf32>
    %29 = tpu.matmul %27, %28, %cst_14 {dimension_numbers = #tpu.dot_dimension_numbers<[1], [1], [0], [0], [0, 0, 1, 0], [], []>} : vector<8x8xf32>, vector<32x8xf32>, vector<8x32xf32> -> vector<8x32xf32>
    %30 = arith.addf %6, %29 : vector<8x32xf32>
    %31 = vector.extract_strided_slice %10 {offsets = [0, 8], sizes = [8, 8], strides = [1, 1]} : vector<8x96xf32> to vector<8x8xf32>
    %cst_15 = arith.constant 0.353553385 : f32
    %32 = vector.broadcast %cst_15 : f32 to vector<8x8xf32>
    %33 = arith.mulf %31, %32 : vector<8x8xf32>
    %34 = vector.extract_strided_slice %10 {offsets = [0, 40], sizes = [8, 8], strides = [1, 1]} : vector<8x96xf32> to vector<8x8xf32>
    %35 = vector.extract_strided_slice %10 {offsets = [0, 72], sizes = [8, 8], strides = [1, 1]} : vector<8x96xf32> to vector<8x8xf32>
    %cst_16 = arith.constant dense<0.000000e+00> : vector<8x8xf32>
    %36 = tpu.matmul %33, %34, %cst_16 {dimension_numbers = #tpu.dot_dimension_numbers<[1], [1], [0], [0], [0, 0, 1, 0], [], []>} : vector<8x8xf32>, vector<8x8xf32>, vector<8x8xf32> -> vector<8x8xf32>
    %cst_17 = arith.constant dense<0xFF800000> : vector<8xf32>
    %37 = vector.multi_reduction <maximumf>, %36, %cst_17 [1] : vector<8x8xf32> to vector<8xf32>
    %38 = vector.shape_cast %37 : vector<8xf32> to vector<8x1xf32>
    %39 = vector.broadcast %38 : vector<8x1xf32> to vector<8x8xf32>
    %40 = arith.subf %36, %39 : vector<8x8xf32>
    %41 = math.exp %40 : vector<8x8xf32>
    %cst_18 = arith.constant dense<0.000000e+00> : vector<8xf32>
    %42 = vector.multi_reduction <add>, %41, %cst_18 [1] : vector<8x8xf32> to vector<8xf32>
    %43 = vector.shape_cast %42 : vector<8xf32> to vector<8x1xf32>
    %cst_19 = arith.constant dense<0.000000e+00> : vector<8x8xf32>
    %44 = tpu.matmul %41, %35, %cst_19 {dimension_numbers = #tpu.dot_dimension_numbers<[1], [0], [0], [1], [0, 0, 1, 1], [], []>} : vector<8x8xf32>, vector<8x8xf32>, vector<8x8xf32> -> vector<8x8xf32>
    %45 = tpu.reciprocal %43 : vector<8x1xf32> -> vector<8x1xf32>
    %46 = vector.broadcast %45 : vector<8x1xf32> to vector<8x8xf32>
    %47 = arith.mulf %44, %46 : vector<8x8xf32>
    %48 = vector.extract_strided_slice %3 {offsets = [0, 8], sizes = [32, 8], strides = [1, 1]} : vector<32x32xf32> to vector<32x8xf32>
    %cst_20 = arith.constant dense<0.000000e+00> : vector<8x32xf32>
    %49 = tpu.matmul %47, %48, %cst_20 {dimension_numbers = #tpu.dot_dimension_numbers<[1], [1], [0], [0], [0, 0, 1, 0], [], []>} : vector<8x8xf32>, vector<32x8xf32>, vector<8x32xf32> -> vector<8x32xf32>
    %50 = arith.addf %30, %49 : vector<8x32xf32>
    %51 = vector.extract_strided_slice %10 {offsets = [0, 16], sizes = [8, 8], strides = [1, 1]} : vector<8x96xf32> to vector<8x8xf32>
    %cst_21 = arith.constant 0.353553385 : f32
    %52 = vector.broadcast %cst_21 : f32 to vector<8x8xf32>
    %53 = arith.mulf %51, %52 : vector<8x8xf32>
    %54 = vector.extract_strided_slice %10 {offsets = [0, 48], sizes = [8, 8], strides = [1, 1]} : vector<8x96xf32> to vector<8x8xf32>
    %55 = vector.extract_strided_slice %10 {offsets = [0, 80], sizes = [8, 8], strides = [1, 1]} : vector<8x96xf32> to vector<8x8xf32>
    %cst_22 = arith.constant dense<0.000000e+00> : vector<8x8xf32>
    %56 = tpu.matmul %53, %54, %cst_22 {dimension_numbers = #tpu.dot_dimension_numbers<[1], [1], [0], [0], [0, 0, 1, 0], [], []>} : vector<8x8xf32>, vector<8x8xf32>, vector<8x8xf32> -> vector<8x8xf32>
    %cst_23 = arith.constant dense<0xFF800000> : vector<8xf32>
    %57 = vector.multi_reduction <maximumf>, %56, %cst_23 [1] : vector<8x8xf32> to vector<8xf32>
    %58 = vector.shape_cast %57 : vector<8xf32> to vector<8x1xf32>
    %59 = vector.broadcast %58 : vector<8x1xf32> to vector<8x8xf32>
    %60 = arith.subf %56, %59 : vector<8x8xf32>
    %61 = math.exp %60 : vector<8x8xf32>
    %cst_24 = arith.constant dense<0.000000e+00> : vector<8xf32>
    %62 = vector.multi_reduction <add>, %61, %cst_24 [1] : vector<8x8xf32> to vector<8xf32>
    %63 = vector.shape_cast %62 : vector<8xf32> to vector<8x1xf32>
    %cst_25 = arith.constant dense<0.000000e+00> : vector<8x8xf32>
    %64 = tpu.matmul %61, %55, %cst_25 {dimension_numbers = #tpu.dot_dimension_numbers<[1], [0], [0], [1], [0, 0, 1, 1], [], []>} : vector<8x8xf32>, vector<8x8xf32>, vector<8x8xf32> -> vector<8x8xf32>
    %65 = tpu.reciprocal %63 : vector<8x1xf32> -> vector<8x1xf32>
    %66 = vector.broadcast %65 : vector<8x1xf32> to vector<8x8xf32>
    %67 = arith.mulf %64, %66 : vector<8x8xf32>
    %68 = vector.extract_strided_slice %3 {offsets = [0, 16], sizes = [32, 8], strides = [1, 1]} : vector<32x32xf32> to vector<32x8xf32>
    %cst_26 = arith.constant dense<0.000000e+00> : vector<8x32xf32>
    %69 = tpu.matmul %67, %68, %cst_26 {dimension_numbers = #tpu.dot_dimension_numbers<[1], [1], [0], [0], [0, 0, 1, 0], [], []>} : vector<8x8xf32>, vector<32x8xf32>, vector<8x32xf32> -> vector<8x32xf32>
    %70 = arith.addf %50, %69 : vector<8x32xf32>
    %71 = vector.extract_strided_slice %10 {offsets = [0, 24], sizes = [8, 8], strides = [1, 1]} : vector<8x96xf32> to vector<8x8xf32>
    %cst_27 = arith.constant 0.353553385 : f32
    %72 = vector.broadcast %cst_27 : f32 to vector<8x8xf32>
    %73 = arith.mulf %71, %72 : vector<8x8xf32>
    %74 = vector.extract_strided_slice %10 {offsets = [0, 56], sizes = [8, 8], strides = [1, 1]} : vector<8x96xf32> to vector<8x8xf32>
    %75 = vector.extract_strided_slice %10 {offsets = [0, 88], sizes = [8, 8], strides = [1, 1]} : vector<8x96xf32> to vector<8x8xf32>
    %cst_28 = arith.constant dense<0.000000e+00> : vector<8x8xf32>
    %76 = tpu.matmul %73, %74, %cst_28 {dimension_numbers = #tpu.dot_dimension_numbers<[1], [1], [0], [0], [0, 0, 1, 0], [], []>} : vector<8x8xf32>, vector<8x8xf32>, vector<8x8xf32> -> vector<8x8xf32>
    %cst_29 = arith.constant dense<0xFF800000> : vector<8xf32>
    %77 = vector.multi_reduction <maximumf>, %76, %cst_29 [1] : vector<8x8xf32> to vector<8xf32>
    %78 = vector.shape_cast %77 : vector<8xf32> to vector<8x1xf32>
    %79 = vector.broadcast %78 : vector<8x1xf32> to vector<8x8xf32>
    %80 = arith.subf %76, %79 : vector<8x8xf32>
    %81 = math.exp %80 : vector<8x8xf32>
    %cst_30 = arith.constant dense<0.000000e+00> : vector<8xf32>
    %82 = vector.multi_reduction <add>, %81, %cst_30 [1] : vector<8x8xf32> to vector<8xf32>
    %83 = vector.shape_cast %82 : vector<8xf32> to vector<8x1xf32>
    %cst_31 = arith.constant dense<0.000000e+00> : vector<8x8xf32>
    %84 = tpu.matmul %81, %75, %cst_31 {dimension_numbers = #tpu.dot_dimension_numbers<[1], [0], [0], [1], [0, 0, 1, 1], [], []>} : vector<8x8xf32>, vector<8x8xf32>, vector<8x8xf32> -> vector<8x8xf32>
    %85 = tpu.reciprocal %83 : vector<8x1xf32> -> vector<8x1xf32>
    %86 = vector.broadcast %85 : vector<8x1xf32> to vector<8x8xf32>
    %87 = arith.mulf %84, %86 : vector<8x8xf32>
    %88 = vector.extract_strided_slice %3 {offsets = [0, 24], sizes = [32, 8], strides = [1, 1]} : vector<32x32xf32> to vector<32x8xf32>
    %cst_32 = arith.constant dense<0.000000e+00> : vector<8x32xf32>
    %89 = tpu.matmul %87, %88, %cst_32 {dimension_numbers = #tpu.dot_dimension_numbers<[1], [1], [0], [0], [0, 0, 1, 0], [], []>} : vector<8x8xf32>, vector<32x8xf32>, vector<8x32xf32> -> vector<8x32xf32>
    %90 = arith.addf %70, %89 : vector<8x32xf32>
    %c0_33 = arith.constant 0 : index
    %c0_34 = arith.constant 0 : index
    %91 = vector.load %arg5[%c0_33, %c0_34] : memref<8x64xf32, #tpu.memory_space<vmem>>, vector<8x32xf32>
    tpu.vector_store %arg5[%c0_33, %c0_34], %90 {strides = array<i32>} : memref<8x64xf32, #tpu.memory_space<vmem>>, vector<8x32xf32>,
    %92 = vector.extract_strided_slice %0 {offsets = [0, 32], sizes = [8, 32], strides = [1, 1]} : vector<8x64xf32> to vector<8x32xf32>
    %cst_35 = arith.constant dense<0.000000e+00> : vector<8x96xf32>
    %93 = tpu.matmul %92, %1, %cst_35 {dimension_numbers = #tpu.dot_dimension_numbers<[1], [1], [0], [0], [0, 0, 1, 0], [], []>} : vector<8x32xf32>, vector<96x32xf32>, vector<8x96xf32> -> vector<8x96xf32>
    %94 = vector.broadcast %2 : vector<1x96xf32> to vector<8x96xf32>
    %95 = arith.addf %93, %94 : vector<8x96xf32>
    %96 = vector.extract_strided_slice %95 {offsets = [0, 0], sizes = [8, 8], strides = [1, 1]} : vector<8x96xf32> to vector<8x8xf32>
    %cst_36 = arith.constant 0.353553385 : f32
    %97 = vector.broadcast %cst_36 : f32 to vector<8x8xf32>
    %98 = arith.mulf %96, %97 : vector<8x8xf32>
    %99 = vector.extract_strided_slice %95 {offsets = [0, 32], sizes = [8, 8], strides = [1, 1]} : vector<8x96xf32> to vector<8x8xf32>
    %100 = vector.extract_strided_slice %95 {offsets = [0, 64], sizes = [8, 8], strides = [1, 1]} : vector<8x96xf32> to vector<8x8xf32>
    %cst_37 = arith.constant dense<0.000000e+00> : vector<8x8xf32>
    %101 = tpu.matmul %98, %99, %cst_37 {dimension_numbers = #tpu.dot_dimension_numbers<[1], [1], [0], [0], [0, 0, 1, 0], [], []>} : vector<8x8xf32>, vector<8x8xf32>, vector<8x8xf32> -> vector<8x8xf32>
    %cst_38 = arith.constant dense<0xFF800000> : vector<8xf32>
    %102 = vector.multi_reduction <maximumf>, %101, %cst_38 [1] : vector<8x8xf32> to vector<8xf32>
    %103 = vector.shape_cast %102 : vector<8xf32> to vector<8x1xf32>
    %104 = vector.broadcast %103 : vector<8x1xf32> to vector<8x8xf32>
    %105 = arith.subf %101, %104 : vector<8x8xf32>
    %106 = math.exp %105 : vector<8x8xf32>
    %cst_39 = arith.constant dense<0.000000e+00> : vector<8xf32>
    %107 = vector.multi_reduction <add>, %106, %cst_39 [1] : vector<8x8xf32> to vector<8xf32>
    %108 = vector.shape_cast %107 : vector<8xf32> to vector<8x1xf32>
    %cst_40 = arith.constant dense<0.000000e+00> : vector<8x8xf32>
    %109 = tpu.matmul %106, %100, %cst_40 {dimension_numbers = #tpu.dot_dimension_numbers<[1], [0], [0], [1], [0, 0, 1, 1], [], []>} : vector<8x8xf32>, vector<8x8xf32>, vector<8x8xf32> -> vector<8x8xf32>
    %110 = tpu.reciprocal %108 : vector<8x1xf32> -> vector<8x1xf32>
    %111 = vector.broadcast %110 : vector<8x1xf32> to vector<8x8xf32>
    %112 = arith.mulf %109, %111 : vector<8x8xf32>
    %113 = vector.extract_strided_slice %3 {offsets = [0, 0], sizes = [32, 8], strides = [1, 1]} : vector<32x32xf32> to vector<32x8xf32>
    %cst_41 = arith.constant dense<0.000000e+00> : vector<8x32xf32>
    %114 = tpu.matmul %112, %113, %cst_41 {dimension_numbers = #tpu.dot_dimension_numbers<[1], [1], [0], [0], [0, 0, 1, 0], [], []>} : vector<8x8xf32>, vector<32x8xf32>, vector<8x32xf32> -> vector<8x32xf32>
    %115 = arith.addf %6, %114 : vector<8x32xf32>
    %116 = vector.extract_strided_slice %95 {offsets = [0, 8], sizes = [8, 8], strides = [1, 1]} : vector<8x96xf32> to vector<8x8xf32>
    %cst_42 = arith.constant 0.353553385 : f32
    %117 = vector.broadcast %cst_42 : f32 to vector<8x8xf32>
    %118 = arith.mulf %116, %117 : vector<8x8xf32>
    %119 = vector.extract_strided_slice %95 {offsets = [0, 40], sizes = [8, 8], strides = [1, 1]} : vector<8x96xf32> to vector<8x8xf32>
    %120 = vector.extract_strided_slice %95 {offsets = [0, 72], sizes = [8, 8], strides = [1, 1]} : vector<8x96xf32> to vector<8x8xf32>
    %cst_43 = arith.constant dense<0.000000e+00> : vector<8x8xf32>
    %121 = tpu.matmul %118, %119, %cst_43 {dimension_numbers = #tpu.dot_dimension_numbers<[1], [1], [0], [0], [0, 0, 1, 0], [], []>} : vector<8x8xf32>, vector<8x8xf32>, vector<8x8xf32> -> vector<8x8xf32>
    %cst_44 = arith.constant dense<0xFF800000> : vector<8xf32>
    %122 = vector.multi_reduction <maximumf>, %121, %cst_44 [1] : vector<8x8xf32> to vector<8xf32>
    %123 = vector.shape_cast %122 : vector<8xf32> to vector<8x1xf32>
    %124 = vector.broadcast %123 : vector<8x1xf32> to vector<8x8xf32>
    %125 = arith.subf %121, %124 : vector<8x8xf32>
    %126 = math.exp %125 : vector<8x8xf32>
    %cst_45 = arith.constant dense<0.000000e+00> : vector<8xf32>
    %127 = vector.multi_reduction <add>, %126, %cst_45 [1] : vector<8x8xf32> to vector<8xf32>
    %128 = vector.shape_cast %127 : vector<8xf32> to vector<8x1xf32>
    %cst_46 = arith.constant dense<0.000000e+00> : vector<8x8xf32>
    %129 = tpu.matmul %126, %120, %cst_46 {dimension_numbers = #tpu.dot_dimension_numbers<[1], [0], [0], [1], [0, 0, 1, 1], [], []>} : vector<8x8xf32>, vector<8x8xf32>, vector<8x8xf32> -> vector<8x8xf32>
    %130 = tpu.reciprocal %128 : vector<8x1xf32> -> vector<8x1xf32>
    %131 = vector.broadcast %130 : vector<8x1xf32> to vector<8x8xf32>
    %132 = arith.mulf %129, %131 : vector<8x8xf32>
    %133 = vector.extract_strided_slice %3 {offsets = [0, 8], sizes = [32, 8], strides = [1, 1]} : vector<32x32xf32> to vector<32x8xf32>
    %cst_47 = arith.constant dense<0.000000e+00> : vector<8x32xf32>
    %134 = tpu.matmul %132, %133, %cst_47 {dimension_numbers = #tpu.dot_dimension_numbers<[1], [1], [0], [0], [0, 0, 1, 0], [], []>} : vector<8x8xf32>, vector<32x8xf32>, vector<8x32xf32> -> vector<8x32xf32>
    %135 = arith.addf %115, %134 : vector<8x32xf32>
    %136 = vector.extract_strided_slice %95 {offsets = [0, 16], sizes = [8, 8], strides = [1, 1]} : vector<8x96xf32> to vector<8x8xf32>
    %cst_48 = arith.constant 0.353553385 : f32
    %137 = vector.broadcast %cst_48 : f32 to vector<8x8xf32>
    %138 = arith.mulf %136, %137 : vector<8x8xf32>
    %139 = vector.extract_strided_slice %95 {offsets = [0, 48], sizes = [8, 8], strides = [1, 1]} : vector<8x96xf32> to vector<8x8xf32>
    %140 = vector.extract_strided_slice %95 {offsets = [0, 80], sizes = [8, 8], strides = [1, 1]} : vector<8x96xf32> to vector<8x8xf32>
    %cst_49 = arith.constant dense<0.000000e+00> : vector<8x8xf32>
    %141 = tpu.matmul %138, %139, %cst_49 {dimension_numbers = #tpu.dot_dimension_numbers<[1], [1], [0], [0], [0, 0, 1, 0], [], []>} : vector<8x8xf32>, vector<8x8xf32>, vector<8x8xf32> -> vector<8x8xf32>
    %cst_50 = arith.constant dense<0xFF800000> : vector<8xf32>
    %142 = vector.multi_reduction <maximumf>, %141, %cst_50 [1] : vector<8x8xf32> to vector<8xf32>
    %143 = vector.shape_cast %142 : vector<8xf32> to vector<8x1xf32>
    %144 = vector.broadcast %143 : vector<8x1xf32> to vector<8x8xf32>
    %145 = arith.subf %141, %144 : vector<8x8xf32>
    %146 = math.exp %145 : vector<8x8xf32>
    %cst_51 = arith.constant dense<0.000000e+00> : vector<8xf32>
    %147 = vector.multi_reduction <add>, %146, %cst_51 [1] : vector<8x8xf32> to vector<8xf32>
    %148 = vector.shape_cast %147 : vector<8xf32> to vector<8x1xf32>
    %cst_52 = arith.constant dense<0.000000e+00> : vector<8x8xf32>
    %149 = tpu.matmul %146, %140, %cst_52 {dimension_numbers = #tpu.dot_dimension_numbers<[1], [0], [0], [1], [0, 0, 1, 1], [], []>} : vector<8x8xf32>, vector<8x8xf32>, vector<8x8xf32> -> vector<8x8xf32>
    %150 = tpu.reciprocal %148 : vector<8x1xf32> -> vector<8x1xf32>
    %151 = vector.broadcast %150 : vector<8x1xf32> to vector<8x8xf32>
    %152 = arith.mulf %149, %151 : vector<8x8xf32>
    %153 = vector.extract_strided_slice %3 {offsets = [0, 16], sizes = [32, 8], strides = [1, 1]} : vector<32x32xf32> to vector<32x8xf32>
    %cst_53 = arith.constant dense<0.000000e+00> : vector<8x32xf32>
    %154 = tpu.matmul %152, %153, %cst_53 {dimension_numbers = #tpu.dot_dimension_numbers<[1], [1], [0], [0], [0, 0, 1, 0], [], []>} : vector<8x8xf32>, vector<32x8xf32>, vector<8x32xf32> -> vector<8x32xf32>
    %155 = arith.addf %135, %154 : vector<8x32xf32>
    %156 = vector.extract_strided_slice %95 {offsets = [0, 24], sizes = [8, 8], strides = [1, 1]} : vector<8x96xf32> to vector<8x8xf32>
    %cst_54 = arith.constant 0.353553385 : f32
    %157 = vector.broadcast %cst_54 : f32 to vector<8x8xf32>
    %158 = arith.mulf %156, %157 : vector<8x8xf32>
    %159 = vector.extract_strided_slice %95 {offsets = [0, 56], sizes = [8, 8], strides = [1, 1]} : vector<8x96xf32> to vector<8x8xf32>
    %160 = vector.extract_strided_slice %95 {offsets = [0, 88], sizes = [8, 8], strides = [1, 1]} : vector<8x96xf32> to vector<8x8xf32>
    %cst_55 = arith.constant dense<0.000000e+00> : vector<8x8xf32>
    %161 = tpu.matmul %158, %159, %cst_55 {dimension_numbers = #tpu.dot_dimension_numbers<[1], [1], [0], [0], [0, 0, 1, 0], [], []>} : vector<8x8xf32>, vector<8x8xf32>, vector<8x8xf32> -> vector<8x8xf32>
    %cst_56 = arith.constant dense<0xFF800000> : vector<8xf32>
    %162 = vector.multi_reduction <maximumf>, %161, %cst_56 [1] : vector<8x8xf32> to vector<8xf32>
    %163 = vector.shape_cast %162 : vector<8xf32> to vector<8x1xf32>
    %164 = vector.broadcast %163 : vector<8x1xf32> to vector<8x8xf32>
    %165 = arith.subf %161, %164 : vector<8x8xf32>
    %166 = math.exp %165 : vector<8x8xf32>
    %cst_57 = arith.constant dense<0.000000e+00> : vector<8xf32>
    %167 = vector.multi_reduction <add>, %166, %cst_57 [1] : vector<8x8xf32> to vector<8xf32>
    %168 = vector.shape_cast %167 : vector<8xf32> to vector<8x1xf32>
    %cst_58 = arith.constant dense<0.000000e+00> : vector<8x8xf32>
    %169 = tpu.matmul %166, %160, %cst_58 {dimension_numbers = #tpu.dot_dimension_numbers<[1], [0], [0], [1], [0, 0, 1, 1], [], []>} : vector<8x8xf32>, vector<8x8xf32>, vector<8x8xf32> -> vector<8x8xf32>
    %170 = tpu.reciprocal %168 : vector<8x1xf32> -> vector<8x1xf32>
    %171 = vector.broadcast %170 : vector<8x1xf32> to vector<8x8xf32>
    %172 = arith.mulf %169, %171 : vector<8x8xf32>
    %173 = vector.extract_strided_slice %3 {offsets = [0, 24], sizes = [32, 8], strides = [1, 1]} : vector<32x32xf32> to vector<32x8xf32>
    %cst_59 = arith.constant dense<0.000000e+00> : vector<8x32xf32>
    %174 = tpu.matmul %172, %173, %cst_59 {dimension_numbers = #tpu.dot_dimension_numbers<[1], [1], [0], [0], [0, 0, 1, 0], [], []>} : vector<8x8xf32>, vector<32x8xf32>, vector<8x32xf32> -> vector<8x32xf32>
    %175 = arith.addf %155, %174 : vector<8x32xf32>
    %c0_60 = arith.constant 0 : index
    %c32 = arith.constant 32 : index
    %176 = vector.load %arg5[%c0_60, %c32] : memref<8x64xf32, #tpu.memory_space<vmem>>, vector<8x32xf32>
    tpu.vector_store %arg5[%c0_60, %c32], %175 {strides = array<i32>} : memref<8x64xf32, #tpu.memory_space<vmem>>, vector<8x32xf32>,
    return
  }
}

</mosaic_0001>

<bundles_post_ra>
// kernel: attention_module_forward.1
= control target key start
LH: loop header
LB: loop body
LE: loop exit
PB: predicated region body
PF: predicated region fallthrough
CT: control target
= control target key end

     0   :  { %vm51_vm0 = vcmask 261120   ;;  %v2835_v0 = vmov 0.0|0.0   ;;  %vm2836_vm2 = vmmov 0   ;;  %v2837_v4 = vmov 0.0   ;;  %s2838_s20 = smov 64   ;;  %s2840_s21 = smov 88   ;;  %s3303_s1 = inlined_call_operand.vmem [shape: f32[96,32], index: 1, kind: input, shape index: {}]   ;;  %s3304_s0 = inlined_call_operand.vmem [shape: f32[8,64], index: 0, kind: input, shape index: {}]   ;;  %s3305_s2 = inlined_call_operand.vmem [shape: f32[1,96], index: 2, kind: input, shape index: {}]   ;;  %s3306_s3 = inlined_call_operand.vmem [shape: f32[32,32], index: 3, kind: input, shape index: {}]   ;;  %s3307_s4 = inlined_call_operand.vmem [shape: f32[1,32], index: 4, kind: input, shape index: {}]   ;;  %s3308_s5 = inlined_call_operand.vmem [shape: f32[8,64], index: 5, kind: output, shape index: {}]  }
   0x1   :  { %2633 = vmatprep.subr.bf16.mxu0 %v2835_v0  ;;  %v21_v1 = vld [vmem:[%s3303_s1] sm:$0xff]  ;;  %v22_v2 = vld [vmem:[%s3303_s1 + $0x8] sm:$0xff]  ;;  %vm2889_vm1 = vmpackc.low %vm51_vm0, %vm51_vm0  ;;  %2435 = vmatprep.mubr.msk.f32.mxu0 %vm2836_vm2, %v2837_v4  ;;  %vm165_vm3 = vcmask 64512   ;;  %s2842_s22 = smov 80   ;;  %s2843_s23 = smov 72   ;;  %vm2215_vm5 = vcmask 523520  }
   0x2   :  { %v2895_v5 = vpack.c.bf16 %v22_v2, %v21_v1  ;;  %2438 = vmatprep.subr.mxu1 %v2837_v4  ;;  %2440 = vmatprep.mubr.msk.f32.mxu1 %vm2836_vm2, %v2837_v4  ;;  %v23_v6 = vld [vmem:[%s3303_s1 + $0x10] sm:$0xff]  ;;  %v24_v7 = vld [vmem:[%s3303_s1 + $0x18] sm:$0xff]  ;;  %v25_v9 = vld [vmem:[%s3303_s1 + $0x20] sm:$0xff]  ;;  %s2844_s24 = smov 104   ;;  %s2845_s25 = smov 112  }
   0x3   :  { %v2910_v8 = vpack.c.bf16 %v24_v7, %v23_v6  ;;  %v26_v10 = vld [vmem:[%s3303_s1 + $0x28] sm:$0xff]  ;;  %v27_v12 = vld [vmem:[%s3303_s1 + $0x30] sm:$0xff]  ;;  %v28_v13 = vld [vmem:[%s3303_s1 + $0x38] sm:$0xff]  ;;  %s2846_s26 = smov 56   ;;  %s2848_s10 = smov 48  }
   0x4   :  { %2636 = vmatpush3.bf16.xpose.msk.msra.mxu0 %vm2889_vm1, %v2895_v5  ;;  %v2922_v11 = vpack.c.bf16 %v26_v10, %v25_v9  ;;  %v2934_v14 = vpack.c.bf16 %v28_v13, %v27_v12  ;;  %v29_v15 = vld [vmem:[%s3303_s1 + $0x40] sm:$0xff]  ;;  %v30_v16 = vld [vmem:[%s3303_s1 + $0x48] sm:$0xff]  ;;  %v31_v18 = vld [vmem:[%s3303_s1 + $0x50] sm:$0xff] }
   0x5   :  { %2637 = vmatprep.subr.bf16.mxu0 %v2835_v0  ;;  %v2946_v17 = vpack.c.bf16 %v30_v16, %v29_v15  ;;  %v32_v19 = vld [vmem:[%s3303_s1 + $0x58] sm:$0xff]  ;;  %v2967_v21 = vld [vmem:[%s3304_s0] sm:$0xff]  ;;  %s2839_s0 = smov 96   ;;  %v35_v40 = vld [vmem:[%s3306_s3 + $0x8] sm:$0xff] }
   0x6   :  { %v2958_v20 = vpack.c.bf16 %v32_v19, %v31_v18  ;;  %v2976_v22 = vld [vmem:[%s3305_s2] ss:$0 sm:$0xff]  ;;  %s2841_s2 = smov 120   ;;  %vm3021_vm4 = vmpackc.low %vm165_vm3, %vm165_vm3  ;;  %v36_v43 = vld [vmem:[%s3306_s3 + $0x10] sm:$0xff] }
   0x7   :  { %v34_v39 = vld [vmem:[%s3306_s3] sm:$0xff]  ;;  %v37_v44 = vld [vmem:[%s3306_s3 + $0x18] sm:$0xff]  ;;  %s2847_s3 = smov 40  }
   0x8   :  { %v3025_v42 = vpack.c.bf16 %v35_v40, %v34_v39  ;;  %v3037_v45 = vpack.c.bf16 %v37_v44, %v36_v43  ;;  %v3065_v2 = vpack.i.bf16 %v35_v40, %v34_v39  ;;  %v3077_v18 = vpack.i.bf16 %v37_v44, %v36_v43 }
   0xc   :  { %2640 = vmatpush3.bf16.xpose.msk.msra.mxu0 %vm2889_vm1, %v2910_v8 }
   0xd   :  { %2641 = vmatprep.subr.bf16.mxu0 %v2835_v0 }
  0x14   :  { %2644 = vmatpush3.bf16.xpose.msk.msra.mxu0 %vm2889_vm1, %v2922_v11 }
  0x15   :  { %2645 = vmatprep.subr.bf16.mxu0 %v2835_v0 }
  0x1c   :  { %2648 = vmatpush3.bf16.xpose.msk.msra.mxu0 %vm2889_vm1, %v2934_v14 }
  0x1d   :  { %2649 = vmatprep.subr.bf16.mxu0 %v2835_v0 }
  0x24   :  { %2652 = vmatpush3.bf16.xpose.msk.msra.mxu0 %vm2889_vm1, %v2946_v17 }
  0x25   :  { %2653 = vmatprep.subr.bf16.mxu0 %v2835_v0 }
  0x2c   :  { %2656 = vmatpush3.bf16.xpose.msk.msra.mxu0 %vm2889_vm1, %v2958_v20 }
  0x2d   :  { %2657 = vmatprep.subr.bf16.mxu0 %v2835_v0 }
  0x33   :  { %2436 = vmatmul.mubr.msk.f32.vlgmr.msra.gmra.mrb[0].mxu0 %vm51_vm0, %v2967_v21 }
  0x34   :  { %2456 = vmatprep.mubr.msk.f32.mxu0 %vm2836_vm2, %v2837_v4  ;;  %2660 = vmatpush3.bf16.xpose.msk.msra.mxu0 %vm3021_vm4, %v3025_v42 }
  0x35   :  { %2661 = vmatprep.subr.bf16.mxu0 %v2835_v0 }
  0x3c   :  { %2664 = vmatpush3.bf16.xpose.msk.msra.mxu0 %vm3021_vm4, %v3037_v45 }
  0x3d   :  { %2480 = vmatprep.subr.mxu0 %v2837_v4 }
 0x106   :  { %v157_v23 = vpop.f32.mrb[0].mxu0 }
 0x107   :  { %v2979_v24 = vadd.f32 %v2976_v22, %v157_v23  ;;  %v2437_v25 = vpop.f32.mrb[1].mxu0 }
 0x109   :  { %250 = vrot.lane.b32.xlu1 %v2979_v24, %s2838_s20  ;;  %163 = vrot.lane.b32.xlu0 %v2979_v24, %s2839_s0  ;;  %v161_v26 = vmul.f32 0.35355338, %v2979_v24 }
 0x10d   :  { %416 = vrot.lane.b32.xlu1 %v2979_v24, %s2840_s21 }
 0x111   :  { %414 = vrot.lane.b32.xlu1 %v161_v26, %s2841_s2 }
 0x17b   :  { %v164_v27 = vpop.permute.xlu0 %163  ;;  %v251_v28 = vpop.permute.xlu1 %250 }
 0x17c   :  { %2439 = vmatpush3.xpose.msk.msra.mxu1 %vm165_vm3, %v164_v27 }
 0x17d   :  { %2443 = vmatprep.subr.mxu1 %v2837_v4 }
 0x17f   :  { %2441 = vmatmul.mubr.msk.f32.vlgmr.msra.gmra.mrb[0].mxu1 %vm165_vm3, %v161_v26  ;;  %v417_v35 = vpop.permute.xlu1 %416 }
 0x180   :  { %2444 = vmatpush3.msra.mxu1 %v251_v28  ;;  %2445 = vmatprep.mubr.msk.f32.mxu1 %vm2836_vm2, %v2837_v4 }
 0x181   :  { %2459 = vmatprep.subr.mxu1 %v2837_v4 }
 0x183   :  { %v415_v38 = vpop.permute.xlu1 %414 }
 0x252   :  { %v237_v29 = vpop.f32.mrb[0].mxu1 }
 0x253   :  { %v2442_v30 = vpop.f32.mrb[1].mxu1  ;;  %v241_v31 = vsel %vm165_vm3, %v237_v29, -inf }
 0x254   :  { %242 = vmax.xlane.f32.xlu0 %v241_v31 }
 0x26a   :  { %671 = vrot.lane.b32.xlu0 %v2979_v24, %s2842_s22 }
 0x26e   :  { %926 = vrot.lane.b32.xlu0 %v2979_v24, %s2843_s23 }
 0x272   :  { %924 = vrot.lane.b32.xlu0 %v161_v26, %s2844_s24 }
 0x2e1   :  { %v243_v32 = vpop.xlane.xlu0 %242 }
 0x2e2   :  { %v244_v33 = vsub.f32 %v237_v29, %v243_v32 }
 0x2e4   :  { %v245_v34 = vmul.f32 1.442695, %v244_v33 }
 0x2e5   :  { %v672_v49 = vpop.permute.xlu0 %671 }
 0x2e6   :  { %2803 = vpow2.f32 %v245_v34 }
 0x2e9   :  { %v927_v54 = vpop.permute.xlu0 %926 }
 0x2ed   :  { %v925_v58 = vpop.permute.xlu0 %924 }
 0x2f0   :  { %v2804_v36 = vpop.eup %2803 }
 0x2f1   :  { %2446 = vmatmul.mubr.msk.f32.vlgmr.msra.gmra.mrb[2].mxu1 %vm165_vm3, %v2804_v36  ;;  %v247_v37 = vsel %vm165_vm3, %v2804_v36, 0.0 }
 0x2f2   :  { %2460 = vmatpush3.xpose.msk.msra.mxu1 %vm165_vm3, %v417_v35  ;;  %248 = vadd.xlane.f32.xlu1 %v247_v37 }
 0x2f3   :  { %2461 = vmatprep.mubr.msk.f32.mxu1 %vm2836_vm2, %v2837_v4  ;;  %2464 = vmatprep.subr.mxu1 %v2837_v4 }
 0x2f5   :  { %2462 = vmatmul.mubr.msk.f32.vlgmr.msra.gmra.mrb[4].mxu1 %vm165_vm3, %v415_v38 }
 0x2f6   :  { %2466 = vmatprep.mubr.msk.f32.mxu1 %vm2836_vm2, %v2837_v4 }
 0x303   :  { %669 = vrot.lane.b32.xlu1 %v161_v26, %s2845_s25 }
 0x307   :  { %501 = vrot.lane.b32.xlu1 %v2979_v24, %s2846_s26 }
 0x37f   :  { %v249_v46 = vpop.xlane.xlu1 %248 }
 0x380   :  { %2805 = vrcp.f32 %v249_v46 }
 0x383   :  { %v670_v47 = vpop.permute.xlu1 %669 }
 0x387   :  { %v502_v48 = vpop.permute.xlu1 %501 }
 0x388   :  { %2465 = vmatpush3.msra.mxu1 %v502_v48 }
 0x389   :  { %2665 = vmatprep.subr.bf16.mxu1 %v2835_v0 }
 0x38a   :  { %v2806_v50 = vpop.eup %2805 }
 0x3c4   :  { %v322_v51 = vpop.f32.mrb[2].mxu1 }
 0x3c5   :  { %v327_v52 = vmul.f32 %v2806_v50, %v322_v51  ;;  %v2447_v53 = vpop.f32.mrb[3].mxu1 }
 0x3c7   :  { %2457 = vmatmul.mubr.msk.f32.vlgmr.msra.gmra.mrb[2].mxu0 %vm165_vm3, %v327_v52 }
 0x3c8   :  { %2481 = vmatpush3.xpose.msk.msra.mxu0 %vm165_vm3, %v672_v49  ;;  %v488_v55 = vpop.f32.mrb[4].mxu1  ;;  %2482 = vmatprep.mubr.msk.f32.mxu0 %vm2836_vm2, %v2837_v4 }
 0x3c9   :  { %v2463_v56 = vpop.f32.mrb[5].mxu1  ;;  %2501 = vmatprep.subr.mxu0 %v2837_v4  ;;  %v492_v57 = vsel %vm165_vm3, %v488_v55, -inf }
 0x3ca   :  { %493 = vmax.xlane.f32.xlu0 %v492_v57 }
 0x3cb   :  { %2483 = vmatmul.mubr.msk.f32.vlgmr.msra.gmra.mrb[4].mxu0 %vm165_vm3, %v670_v47 }
 0x3cc   :  { %2502 = vmatpush3.xpose.msk.msra.mxu0 %vm165_vm3, %v927_v54  ;;  %2503 = vmatprep.mubr.msk.f32.mxu0 %vm2836_vm2, %v2837_v4 }
 0x3cd   :  { %2506 = vmatprep.subr.mxu0 %v2837_v4 }
 0x3cf   :  { %2504 = vmatmul.mubr.msk.f32.vlgmr.msra.gmra.mrb[6].mxu0 %vm165_vm3, %v925_v58 }
 0x3d0   :  { %2508 = vmatprep.mubr.msk.f32.mxu0 %vm2836_vm2, %v2837_v4 }
 0x3e0   :  { %1011 = vrot.lane.b32.xlu0 %v2979_v24, %s2847_s3 }
 0x457   :  { %v494_v59 = vpop.xlane.xlu0 %493 }
 0x458   :  { %v495_v60 = vsub.f32 %v488_v55, %v494_v59 }
 0x45a   :  { %v496_v61 = vmul.f32 1.442695, %v495_v60 }
 0x45b   :  { %v1012_v62 = vpop.permute.xlu0 %1011 }
 0x45c   :  { %2807 = vpow2.f32 %v496_v61  ;;  %2507 = vmatpush3.msra.mxu0 %v1012_v62 }
 0x45d   :  { %2689 = vmatprep.subr.bf16.mxu0 %v2835_v0 }
 0x466   :  { %v2808_v63 = vpop.eup %2807 }
 0x467   :  { %2467 = vmatmul.mubr.msk.f32.vlgmr.msra.gmra.mrb[6].mxu1 %vm165_vm3, %v2808_v63  ;;  %v498_v1 = vsel %vm165_vm3, %v2808_v63, 0.0 }
 0x468   :  { %499 = vadd.xlane.f32.xlu0 %v498_v1  ;;  %2477 = vmatprep.mubr.msk.f32.mxu1 %vm2836_vm2, %v2837_v4 }
 0x47e   :  { %2774 = vrot.lane.b32.xlu0 %v3065_v2, %s2841_s2 }
 0x482   :  { %756 = vrot.lane.b32.xlu0 %v2979_v24, %s2848_s10 }
 0x49a   :  { %v3071_v6 = vpop.f32.mrb[2].mxu0 }
 0x49b   :  { %v2458_v7 = vpop.f32.mrb[3].mxu0 }
 0x49e   :  { %v743_v9 = vpop.f32.mrb[4].mxu0 }
 0x49f   :  { %v2484_v10 = vpop.f32.mrb[5].mxu0  ;;  %v747_v16 = vsel %vm165_vm3, %v743_v9, -inf }
 0x4a2   :  { %v998_v12 = vpop.f32.mrb[6].mxu0 }
 0x4a3   :  { %v2505_v13 = vpop.f32.mrb[7].mxu0  ;;  %v1002_v15 = vsel %vm165_vm3, %v998_v12, -inf }
 0x4a4   :  { %1003 = vmax.xlane.f32.xlu1 %v1002_v15 }
 0x4b5   :  { %1180 = vrot.lane.b32.xlu1 %v2967_v21, %s2839_s0 }
 0x4d9   :  { %748 = vmax.xlane.f32.xlu1 %v747_v16 }
 0x4ea   :  { %2779 = vrot.lane.b32.xlu1 %v3077_v18, %s2841_s2 }
 0x4ee   :  { %2784 = vrot.lane.b32.xlu1 %v3065_v2, %s2845_s25 }
 0x4f5   :  { %v500_v19 = vpop.xlane.xlu0 %499 }
 0x4f6   :  { %2809 = vrcp.f32 %v500_v19 }
 0x4f9   :  { %v2775_v23 = vpop.permute.xlu0 %2774 }
 0x4fa   :  { %v2777_v24 = vunpack.i.h.bf16 %v2775_v23  ;;  %v2776_v25 = vunpack.i.l.bf16 %v2775_v23 }
 0x4fc   :  { %v3081_v26 = vpack.c.bf16 %v2777_v24, %v2776_v25 }
 0x4fd   :  { %v757_v3 = vpop.permute.xlu0 %756 }
 0x4fe   :  { %2668 = vmatpush3.bf16.xpose.msk.msra.mxu1 %vm3021_vm4, %v3081_v26 }
 0x4ff   :  { %2669 = vmatprep.subr.bf16.mxu1 %v2835_v0 }
 0x500   :  { %v2810_v29 = vpop.eup %2809 }
 0x531   :  { %v1004_v21 = vpop.xlane.xlu1 %1003 }
 0x532   :  { %v1005_v27 = vsub.f32 %v998_v12, %v1004_v21 }
 0x534   :  { %v1006_v28 = vmul.f32 1.442695, %v1005_v27 }
 0x536   :  { %2811 = vpow2.f32 %v1006_v28 }
 0x53a   :  { %v573_v30 = vpop.f32.mrb[6].mxu1 }
 0x53b   :  { %v578_v31 = vmul.f32 %v2810_v29, %v573_v30  ;;  %v2468_v32 = vpop.f32.mrb[7].mxu1  ;;  %v3224_v30 = vld [vmem:[%s3307_s4] ss:$0 sm:$0xff]  ;;  %s2849_s4 = smov 32  }
 0x540   :  { %v2812_v33 = vpop.eup %2811 }
 0x541   :  { %2509 = vmatmul.mubr.msk.f32.vlgmr.msra.gmra.mrb[8].mxu0 %vm165_vm3, %v2812_v33  ;;  %v1008_v52 = vsel %vm165_vm3, %v2812_v33, 0.0 }
 0x542   :  { %2692 = vmatpush3.bf16.xpose.msk.msra.mxu0 %vm2889_vm1, %v2895_v5  ;;  %2546 = vmatprep.mubr.msk.f32.mxu0 %vm2836_vm2, %v2837_v4  ;;  %v1181_v5 = vpop.permute.xlu1 %1180 }
 0x543   :  { %2693 = vmatprep.subr.bf16.mxu0 %v2835_v0 }
 0x54a   :  { %2696 = vmatpush3.bf16.xpose.msk.msra.mxu0 %vm2889_vm1, %v2910_v8 }
 0x54b   :  { %2697 = vmatprep.subr.bf16.mxu0 %v2835_v0 }
 0x552   :  { %2700 = vmatpush3.bf16.xpose.msk.msra.mxu0 %vm2889_vm1, %v2922_v11 }
 0x553   :  { %2701 = vmatprep.subr.bf16.mxu0 %v2835_v0 }
 0x55a   :  { %2704 = vmatpush3.bf16.xpose.msk.msra.mxu0 %vm2889_vm1, %v2934_v14 }
 0x55b   :  { %2705 = vmatprep.subr.bf16.mxu0 %v2835_v0 }
 0x562   :  { %2708 = vmatpush3.bf16.xpose.msk.msra.mxu0 %vm2889_vm1, %v2946_v17 }
 0x563   :  { %2709 = vmatprep.subr.bf16.mxu0 %v2835_v0 }
 0x566   :  { %v749_v8 = vpop.xlane.xlu1 %748 }
 0x567   :  { %v750_v34 = vsub.f32 %v743_v9, %v749_v8 }
 0x569   :  { %v751_v35 = vmul.f32 1.442695, %v750_v34 }
 0x56a   :  { %2712 = vmatpush3.bf16.xpose.msk.msra.mxu0 %vm2889_vm1, %v2958_v20  ;;  %v2780_v11 = vpop.permute.xlu1 %2779 }
 0x56b   :  { %v2782_v36 = vunpack.i.h.bf16 %v2780_v11  ;;  %v2781_v37 = vunpack.i.l.bf16 %v2780_v11  ;;  %2570 = vmatprep.subr.mxu0 %v2837_v4  ;;  %2813 = vpow2.f32 %v751_v35 }
 0x56d   :  { %v3114_v14 = vpack.c.bf16 %v2782_v36, %v2781_v37 }
 0x56e   :  { %v2785_v39 = vpop.permute.xlu1 %2784 }
 0x56f   :  { %2672 = vmatpush3.bf16.xpose.msk.msra.mxu1 %vm3021_vm4, %v3114_v14  ;;  %v2787_v40 = vunpack.i.h.bf16 %v2785_v39  ;;  %v2786_v43 = vunpack.i.l.bf16 %v2785_v39 }
 0x570   :  { %2485 = vmatprep.subr.mxu1 %v2837_v4 }
 0x571   :  { %2547 = vmatmul.mubr.msk.f32.vlgmr.msra.gmra.mrb[10].mxu0 %vm51_vm0, %v1181_v5  ;;  %v3134_v44 = vpack.c.bf16 %v2787_v40, %v2786_v43 }
 0x572   :  { %2572 = vmatprep.mubr.msk.f32.mxu0 %vm2836_vm2, %v2837_v4 }
 0x575   :  { %v2814_v17 = vpop.eup %2813 }
 0x576   :  { %2478 = vmatmul.mubr.msk.f32.vlgmr.msra.gmra.mrb[8].mxu1 %vm165_vm3, %v578_v31  ;;  %v413_v31 = vadd.f32 %v3224_v30, %v3071_v6 }
 0x577   :  { %2486 = vmatpush3.msra.mxu1 %v757_v3  ;;  %2487 = vmatprep.mubr.msk.f32.mxu1 %vm2836_vm2, %v2837_v4 }
 0x578   :  { %2673 = vmatprep.subr.bf16.mxu1 %v2835_v0 }
 0x57a   :  { %2488 = vmatmul.mubr.msk.f32.vlgmr.msra.gmra.mrb[10].mxu1 %vm165_vm3, %v2814_v17 }
 0x57b   :  { %2498 = vmatprep.mubr.msk.f32.mxu1 %vm2836_vm2, %v2837_v4 }
 0x57e   :  { %2676 = vmatpush3.bf16.xpose.msk.msra.mxu1 %vm3021_vm4, %v3134_v44 }
 0x57f   :  { %2677 = vmatprep.subr.bf16.mxu1 %v2835_v0 }
 0x614   :  { %v3132_v20 = vpop.f32.mrb[8].mxu0 }
 0x615   :  { %v2510_v38 = vpop.f32.mrb[9].mxu0 }
 0x644   :  { %v1250_v46 = vpop.f32.mrb[10].mxu0 }
 0x645   :  { %v3141_v47 = vadd.f32 %v2976_v22, %v1250_v46  ;;  %v2548_v48 = vpop.f32.mrb[11].mxu0  ;;  %v753_v22 = vsel %vm165_vm3, %v2814_v17, 0.0 }
 0x647   :  { %1496 = vrot.lane.b32.xlu0 %v3141_v47, %s2840_s21  ;;  %v3146_v49 = vmul.f32 0.35355338, %v3141_v47 }
 0x649   :  { %1494 = vrot.lane.b32.xlu1 %v3146_v49, %s2841_s2 }
 0x64b   :  { %1735 = vrot.lane.b32.xlu0 %v3141_v47, %s2842_s22 }
 0x64d   :  { %1733 = vrot.lane.b32.xlu1 %v3146_v49, %s2845_s25  ;;  %v828_v50 = vpop.f32.mrb[10].mxu1 }
 0x64e   :  { %v2489_v51 = vpop.f32.mrb[11].mxu1 }
 0x66a   :  { %754 = vadd.xlane.f32.xlu0 %v753_v22 }
 0x671   :  { %1009 = vadd.xlane.f32.xlu1 %v1008_v52 }
 0x680   :  { %2789 = vrot.lane.b32.xlu0 %v3077_v18, %s2845_s25 }
 0x682   :  { %2794 = vrot.lane.b32.xlu1 %v3065_v2, %s2844_s24 }
 0x684   :  { %2799 = vrot.lane.b32.xlu0 %v3077_v18, %s2844_s24 }
 0x688   :  { %1256 = vrot.lane.b32.xlu0 %v3141_v47, %s2839_s0 }
 0x68c   :  { %1820 = vrot.lane.b32.xlu0 %v3141_v47, %s2848_s10 }
 0x690   :  { %1974 = vrot.lane.b32.xlu0 %v3141_v47, %s2843_s23 }
 0x694   :  { %1972 = vrot.lane.b32.xlu0 %v3146_v49, %s2844_s24 }
 0x6b9   :  { %v1497_v53 = vpop.permute.xlu0 %1496 }
 0x6ba   :  { %2571 = vmatpush3.xpose.msk.msra.mxu0 %vm165_vm3, %v1497_v53 }
 0x6bb   :  { %v1495_v54 = vpop.permute.xlu1 %1494  ;;  %2591 = vmatprep.subr.mxu0 %v2837_v4 }
 0x6bd   :  { %v1736_v55 = vpop.permute.xlu0 %1735  ;;  %2573 = vmatmul.mubr.msk.f32.vlgmr.msra.gmra.mrb[12].mxu0 %vm165_vm3, %v1495_v54 }
 0x6be   :  { %2592 = vmatpush3.xpose.msk.msra.mxu0 %vm165_vm3, %v1736_v55  ;;  %2593 = vmatprep.mubr.msk.f32.mxu0 %vm2836_vm2, %v2837_v4 }
 0x6bf   :  { %v1734_v56 = vpop.permute.xlu1 %1733  ;;  %2596 = vmatprep.subr.mxu0 %v2837_v4 }
 0x6c1   :  { %2594 = vmatmul.mubr.msk.f32.vlgmr.msra.gmra.mrb[14].mxu0 %vm165_vm3, %v1734_v56 }
 0x6c2   :  { %2598 = vmatprep.mubr.msk.f32.mxu0 %vm2836_vm2, %v2837_v4 }
 0x6f7   :  { %v755_v57 = vpop.xlane.xlu0 %754 }
 0x6f8   :  { %2815 = vrcp.f32 %v755_v57 }
 0x6fb   :  { %v2790_v58 = vpop.permute.xlu0 %2789 }
 0x6fc   :  { %v2792_v59 = vunpack.i.h.bf16 %v2790_v58  ;;  %v2791_v60 = vunpack.i.l.bf16 %v2790_v58 }
 0x6fe   :  { %v3180_v61 = vpack.c.bf16 %v2792_v59, %v2791_v60  ;;  %v1010_v62 = vpop.xlane.xlu1 %1009 }
 0x6ff   :  { %v2800_v63 = vpop.permute.xlu0 %2799  ;;  %2817 = vrcp.f32 %v1010_v62 }
 0x700   :  { %2680 = vmatpush3.bf16.xpose.msk.msra.mxu1 %vm3021_vm4, %v3180_v61  ;;  %v2802_v16 = vunpack.i.h.bf16 %v2800_v63  ;;  %v2801_v18 = vunpack.i.l.bf16 %v2800_v63 }
 0x701   :  { %2681 = vmatprep.subr.bf16.mxu1 %v2835_v0 }
 0x702   :  { %v2816_v1 = vpop.eup %2815  ;;  %v2795_v2 = vpop.permute.xlu1 %2794  ;;  %v3196_v19 = vpack.c.bf16 %v2802_v16, %v2801_v18 }
 0x703   :  { %v1257_v7 = vpop.permute.xlu0 %1256  ;;  %v2797_v9 = vunpack.i.h.bf16 %v2795_v2  ;;  %v2796_v10 = vunpack.i.l.bf16 %v2795_v2  ;;  %v833_v12 = vmul.f32 %v2816_v1, %v828_v50 }
 0x705   :  { %v3186_v13 = vpack.c.bf16 %v2797_v9, %v2796_v10 }
 0x707   :  { %v1821_v15 = vpop.permute.xlu0 %1820  ;;  %2499 = vmatmul.mubr.msk.f32.vlgmr.msra.gmra.mrb[8].mxu1 %vm165_vm3, %v833_v12 }
 0x708   :  { %2684 = vmatpush3.bf16.xpose.msk.msra.mxu1 %vm3021_vm4, %v3186_v13  ;;  %2597 = vmatpush3.msra.mxu0 %v1821_v15 }
 0x709   :  { %2685 = vmatprep.subr.bf16.mxu1 %v2835_v0  ;;  %2519 = vmatprep.mubr.msk.f32.mxu1 %vm2836_vm2, %v2837_v4  ;;  %v2818_v23 = vpop.eup %2817 }
 0x70a   :  { %2612 = vmatprep.subr.mxu0 %v2837_v4  ;;  %v1088_v24 = vmul.f32 %v2818_v23, %v3132_v20 }
 0x70b   :  { %v1975_v6 = vpop.permute.xlu0 %1974 }
 0x70f   :  { %v1973_v39 = vpop.permute.xlu0 %1972 }
 0x710   :  { %2688 = vmatpush3.bf16.xpose.msk.msra.mxu1 %vm3021_vm4, %v3196_v19 }
 0x711   :  { %2549 = vmatprep.subr.mxu1 %v2837_v4 }
 0x717   :  { %2520 = vmatmul.mubr.msk.f32.vlgmr.msra.gmra.mrb[8].mxu1 %vm165_vm3, %v1088_v24 }
 0x718   :  { %2550 = vmatpush3.xpose.msk.msra.mxu1 %vm165_vm3, %v1257_v7  ;;  %2551 = vmatprep.mubr.msk.f32.mxu1 %vm2836_vm2, %v2837_v4 }
 0x719   :  { %2554 = vmatprep.subr.mxu1 %v2837_v4 }
 0x71b   :  { %2552 = vmatmul.mubr.msk.f32.vlgmr.msra.gmra.mrb[12].mxu1 %vm165_vm3, %v3146_v49 }
 0x71c   :  { %2556 = vmatprep.mubr.msk.f32.mxu1 %vm2836_vm2, %v2837_v4 }
 0x790   :  { %v3212_v25 = vpop.f32.mrb[12].mxu0 }
 0x791   :  { %v2574_v21 = vpop.f32.mrb[13].mxu0  ;;  %v1572_v50 = vsel %vm165_vm3, %v3212_v25, -inf }
 0x794   :  { %v1807_v27 = vpop.f32.mrb[14].mxu0 }
 0x795   :  { %v2595_v28 = vpop.f32.mrb[15].mxu0  ;;  %v1811_v29 = vsel %vm165_vm3, %v1807_v27, -inf }
 0x796   :  { %1812 = vmax.xlane.f32.xlu1 %v1811_v29 }
 0x7a7   :  { %1342 = vrot.lane.b32.xlu1 %v3141_v47, %s2838_s20 }
 0x7ab   :  { %1581 = vrot.lane.b32.xlu1 %v3141_v47, %s2846_s26 }
 0x7af   :  { %2059 = vrot.lane.b32.xlu1 %v3141_v47, %s2847_s3 }
 0x7ea   :  { %v1174_v32 = vpop.f32.mrb[8].mxu1 }
 0x7eb   :  { %v2746_v33 = vadd.f32 %v1174_v32, %v413_v31  ;;  %v2521_v5 = vpop.f32.mrb[9].mxu1 }
 0x7ed   :  { %1179 = vst.msk [vmem:[%s3308_s5] sm:$0xff] %vm51_vm0, %v2746_v33 }
 0x7ee   :  { %v1329_v8 = vpop.f32.mrb[12].mxu1 }
 0x7ef   :  { %v2553_v34 = vpop.f32.mrb[13].mxu1  ;;  %v1333_v11 = vsel %vm165_vm3, %v1329_v8, -inf }
 0x7f0   :  { %1334 = vmax.xlane.f32.xlu0 %v1333_v11 }
 0x823   :  { %v1813_v35 = vpop.xlane.xlu1 %1812 }
 0x824   :  { %v1814_v36 = vsub.f32 %v1807_v27, %v1813_v35 }
 0x826   :  { %v1815_v37 = vmul.f32 1.442695, %v1814_v36 }
 0x827   :  { %v1343_v3 = vpop.permute.xlu1 %1342 }
 0x828   :  { %2819 = vpow2.f32 %v1815_v37  ;;  %2555 = vmatpush3.msra.mxu1 %v1343_v3 }
 0x829   :  { %2713 = vmatprep.subr.bf16.mxu1 %v2835_v0 }
 0x82b   :  { %v1582_v17 = vpop.permute.xlu1 %1581 }
 0x82f   :  { %v2060_v40 = vpop.permute.xlu1 %2059 }
 0x832   :  { %v2820_v20 = vpop.eup %2819 }
 0x833   :  { %2599 = vmatmul.mubr.msk.f32.vlgmr.msra.gmra.mrb[16].mxu0 %vm165_vm3, %v2820_v20  ;;  %v1817_v38 = vsel %vm165_vm3, %v2820_v20, 0.0 }
 0x834   :  { %2613 = vmatpush3.xpose.msk.msra.mxu0 %vm165_vm3, %v1975_v6  ;;  %1818 = vadd.xlane.f32.xlu1 %v1817_v38 }
 0x835   :  { %2614 = vmatprep.mubr.msk.f32.mxu0 %vm2836_vm2, %v2837_v4  ;;  %2617 = vmatprep.subr.mxu0 %v2837_v4 }
 0x837   :  { %2615 = vmatmul.mubr.msk.f32.vlgmr.msra.gmra.mrb[18].mxu0 %vm165_vm3, %v1973_v39 }
 0x838   :  { %2618 = vmatpush3.msra.mxu0 %v2060_v40  ;;  %2619 = vmatprep.mubr.msk.f32.mxu0 %vm2836_vm2, %v2837_v4 }
 0x87d   :  { %v1335_v43 = vpop.xlane.xlu0 %1334 }
 0x87e   :  { %v1336_v46 = vsub.f32 %v1329_v8, %v1335_v43 }
 0x880   :  { %v1337_v47 = vmul.f32 1.442695, %v1336_v46 }
 0x882   :  { %2821 = vpow2.f32 %v1337_v47 }
 0x88c   :  { %v2822_v48 = vpop.eup %2821 }
 0x88d   :  { %2557 = vmatmul.mubr.msk.f32.vlgmr.msra.gmra.mrb[14].mxu1 %vm165_vm3, %v2822_v48  ;;  %v1339_v49 = vsel %vm165_vm3, %v2822_v48, 0.0 }
 0x88e   :  { %1340 = vadd.xlane.f32.xlu0 %v1339_v49  ;;  %2716 = vmatpush3.bf16.xpose.msk.msra.mxu1 %vm3021_vm4, %v3025_v42 }
 0x88f   :  { %2717 = vmatprep.subr.bf16.mxu1 %v2835_v0  ;;  %2567 = vmatprep.mubr.msk.f32.mxu1 %vm2836_vm2, %v2837_v4 }
 0x892   :  { %1573 = vmax.xlane.f32.xlu0 %v1572_v50 }
 0x896   :  { %2720 = vmatpush3.bf16.xpose.msk.msra.mxu1 %vm3021_vm4, %v3037_v45 }
 0x897   :  { %2575 = vmatprep.subr.mxu1 %v2837_v4 }
 0x8c1   :  { %v1819_v23 = vpop.xlane.xlu1 %1818 }
 0x906   :  { %v1892_v51 = vpop.f32.mrb[16].mxu0 }
 0x907   :  { %v2600_v22 = vpop.f32.mrb[17].mxu0 }
 0x90a   :  { %v2046_v52 = vpop.f32.mrb[18].mxu0 }
 0x90b   :  { %v2616_v53 = vpop.f32.mrb[19].mxu0  ;;  %v2050_v42 = vsel %vm165_vm3, %v2046_v52, -inf }
 0x90c   :  { %2051 = vmax.xlane.f32.xlu0 %v2050_v42 }
 0x91b   :  { %v1341_v54 = vpop.xlane.xlu0 %1340 }
 0x91f   :  { %v1574_v55 = vpop.xlane.xlu0 %1573 }
 0x920   :  { %v1575_v56 = vsub.f32 %v3212_v25, %v1574_v55 }
 0x922   :  { %v1576_v57 = vmul.f32 1.442695, %v1575_v56 }
 0x924   :  { %2823 = vpow2.f32 %v1576_v57 }
 0x925   :  { %2825 = vrcp.f32 %v1341_v54 }
 0x92e   :  { %v2824_v58 = vpop.eup %2823 }
 0x92f   :  { %v1578_v59 = vsel %vm165_vm3, %v2824_v58, 0.0  ;;  %v2826_v45 = vpop.eup %2825 }
 0x930   :  { %1579 = vadd.xlane.f32.xlu0 %v1578_v59 }
 0x960   :  { %v1414_v60 = vpop.f32.mrb[14].mxu1 }
 0x961   :  { %v1419_v62 = vmul.f32 %v2826_v45, %v1414_v60  ;;  %v2558_v63 = vpop.f32.mrb[15].mxu1 }
 0x963   :  { %2568 = vmatmul.mubr.msk.f32.vlgmr.msra.gmra.mrb[16].mxu1 %vm165_vm3, %v1419_v62 }
 0x964   :  { %2576 = vmatpush3.msra.mxu1 %v1582_v17  ;;  %2577 = vmatprep.mubr.msk.f32.mxu1 %vm2836_vm2, %v2837_v4 }
 0x965   :  { %2721 = vmatprep.subr.bf16.mxu1 %v2835_v0 }
 0x967   :  { %2578 = vmatmul.mubr.msk.f32.vlgmr.msra.gmra.mrb[18].mxu1 %vm165_vm3, %v2824_v58 }
 0x968   :  { %2588 = vmatprep.mubr.msk.f32.mxu1 %vm2836_vm2, %v2837_v4 }
 0x96b   :  { %2724 = vmatpush3.bf16.xpose.msk.msra.mxu1 %vm3021_vm4, %v3081_v26 }
 0x96c   :  { %2725 = vmatprep.subr.bf16.mxu1 %v2835_v0 }
 0x973   :  { %2728 = vmatpush3.bf16.xpose.msk.msra.mxu1 %vm3021_vm4, %v3114_v14 }
 0x974   :  { %2729 = vmatprep.subr.bf16.mxu1 %v2835_v0 }
 0x999   :  { %v2052_v1 = vpop.xlane.xlu0 %2051 }
 0x99a   :  { %v2053_v2 = vsub.f32 %v2046_v52, %v2052_v1 }
 0x99c   :  { %v2054_v7 = vmul.f32 1.442695, %v2053_v2 }
 0x99e   :  { %2827 = vpow2.f32 %v2054_v7 }
 0x9a8   :  { %v2828_v9 = vpop.eup %2827 }
 0x9a9   :  { %2620 = vmatmul.mubr.msk.f32.vlgmr.msra.gmra.mrb[20].mxu0 %vm165_vm3, %v2828_v9  ;;  %v2056_v10 = vsel %vm165_vm3, %v2828_v9, 0.0 }
 0x9aa   :  { %2057 = vadd.xlane.f32.xlu0 %v2056_v10 }
 0x9bd   :  { %v1580_v12 = vpop.xlane.xlu0 %1579 }
 0x9be   :  { %2829 = vrcp.f32 %v1580_v12 }
 0x9bf   :  { %2831 = vrcp.f32 %v1819_v23 }
 0x9c8   :  { %v2830_v26 = vpop.eup %2829 }
 0x9c9   :  { %v2832_v14 = vpop.eup %2831 }
 0x9ca   :  { %v1897_v24 = vmul.f32 %v2832_v14, %v1892_v51 }
 0xa3a   :  { %v1653_v15 = vpop.f32.mrb[18].mxu1 }
 0xa3b   :  { %v1658_v16 = vmul.f32 %v2830_v26, %v1653_v15  ;;  %v2579_v18 = vpop.f32.mrb[19].mxu1 }
 0xa3d   :  { %2589 = vmatmul.mubr.msk.f32.vlgmr.msra.gmra.mrb[16].mxu1 %vm165_vm3, %v1658_v16 }
 0xa3e   :  { %2732 = vmatpush3.bf16.xpose.msk.msra.mxu1 %vm3021_vm4, %v3134_v44  ;;  %2609 = vmatprep.mubr.msk.f32.mxu1 %vm2836_vm2, %v2837_v4  ;;  %v2058_v44 = vpop.xlane.xlu0 %2057 }
 0xa3f   :  { %2733 = vmatprep.subr.bf16.mxu1 %v2835_v0  ;;  %2833 = vrcp.f32 %v2058_v44 }
 0xa46   :  { %2736 = vmatpush3.bf16.xpose.msk.msra.mxu1 %vm3021_vm4, %v3180_v61 }
 0xa47   :  { %2737 = vmatprep.subr.bf16.mxu1 %v2835_v0 }
 0xa49   :  { %v2834_v61 = vpop.eup %2833 }
 0xa4d   :  { %2610 = vmatmul.mubr.msk.f32.vlgmr.msra.gmra.mrb[16].mxu1 %vm165_vm3, %v1897_v24 }
 0xa4e   :  { %2740 = vmatpush3.bf16.xpose.msk.msra.mxu1 %vm3021_vm4, %v3186_v13  ;;  %2630 = vmatprep.mubr.msk.f32.mxu1 %vm2836_vm2, %v2837_v4 }
 0xa4f   :  { %2741 = vmatprep.subr.bf16.mxu1 %v2835_v0 }
 0xa56   :  { %2744 = vmatpush3.bf16.xpose.msk.msra.mxu1 %vm3021_vm4, %v3196_v19 }
 0xa7c   :  { %v2131_v25 = vpop.f32.mrb[20].mxu0 }
 0xa7d   :  { %v2136_v21 = vmul.f32 %v2834_v61, %v2131_v25  ;;  %v2621_v27 = vpop.f32.mrb[21].mxu0 }
 0xa7f   :  { %2631 = vmatmul.mubr.msk.f32.vlgmr.msra.gmra.mrb[16].mxu1 %vm165_vm3, %v2136_v21 }
 0xb52   :  { %v2206_v28 = vpop.f32.mrb[16].mxu1 }
 0xb53   :  { %v2747_v13 = vadd.f32 %v3224_v30, %v2206_v28  ;;  %v2632_v29 = vpop.f32.mrb[17].mxu1 }
 0xb55   :  { %2212 = vrot.lane.b32.xlu0 %v2747_v13, %s2849_s4 }
 0xbc7   :  { %v2213_v0 = vpop.permute.xlu0 %2212 }
 0xbc8   :  { %2216 = vst.msk [vmem:[%s3308_s5] sm:$0xff] %vm2215_vm5, %v2213_v0 }

</bundles_post_ra>
